<compile_context>
chip_gen: v6e
topology: v6e:2x2x1
jax: 0.10.0
libtpu: 0.0.40
codegen_flags: <defaults>
</compile_context>

<pallas_src>
import jax
import jax.numpy as jnp
from jax.experimental import pallas as pl
from jax.experimental.pallas import tpu as pltpu


def _round_up(n, m):
    return ((n + m - 1) // m) * m


def concat_mlp_kernel(x_ref, w1_ref, b1_ref, w2_ref, b2_ref, o_ref):
    # ReLU on the input
    x = jnp.maximum(x_ref[...], 0.0)

    # Read biases once (cheap insurance against re-broadcast if this body is
    # ever wrapped in an in-kernel loop over batch tiles).
    b1 = b1_ref[...]
    b2 = b2_ref[...]

    # Linear1: (B, D) @ (D, Hp) + (1, Hp)   (Hp = 256, zero-padded -> inert)
    h = jnp.dot(x, w1_ref[...], preferred_element_type=jnp.float32) + b1

    # Linear2: (B, Hp) @ (Hp, Ap) + (1, Ap) (Ap = 128; padded logits = -1e30)
    logits = jnp.dot(h, w2_ref[...], preferred_element_type=jnp.float32) + b2

    # Numerically stable softmax over the last axis. Padded columns carry
    # a -1e30 logit so exp() underflows to exactly 0 and they contribute
    # nothing to the denominator.
    m = jnp.max(logits, axis=-1, keepdims=True)
    e = jnp.exp(logits - m)
    denom = jnp.sum(e, axis=-1, keepdims=True)

    # EUP approximate reciprocal + one Newton-Raphson refinement step
    # (restores ~f32 accuracy while keeping the divide off the VALU).
    r = pl.reciprocal(denom, approx=True)
    r = r * (2.0 - denom * r)

    o_ref[...] = (e * r).astype(o_ref.dtype)


@jax.jit
def concat_forward(x, w1, b1, w2, b2):
    B, D = x.shape
    H = w1.shape[1]
    A = w2.shape[1]

    # Pad hidden and action dims up to lane multiples (200 -> 256, 10 -> 128)
    # for clean MXU tiling and an unmasked, lane-dense output store.
    Hp = _round_up(H, 128)
    Ap = _round_up(A, 128)
    NEG = jnp.float32(-1e30)

    w1p = jnp.pad(w1, ((0, 0), (0, Hp - H)))                        # zero cols
    b1p = jnp.pad(b1, ((0, 0), (0, Hp - H)))                        # zero cols
    w2p = jnp.pad(w2, ((0, Hp - H), (0, Ap - A)))                   # zero rows/cols
    b2p = jnp.pad(b2, ((0, 0), (0, Ap - A)), constant_values=NEG)   # -inf-ish logits

    vmem = pltpu.MemorySpace.VMEM
    out = pl.pallas_call(
        concat_mlp_kernel,
        out_shape=jax.ShapeDtypeStruct((B, Ap), jnp.float32),
        in_specs=[
            pl.BlockSpec(memory_space=vmem),  # x
            pl.BlockSpec(memory_space=vmem),  # w1 (D, Hp)
            pl.BlockSpec(memory_space=vmem),  # b1 (1, Hp)
            pl.BlockSpec(memory_space=vmem),  # w2 (Hp, Ap)
            pl.BlockSpec(memory_space=vmem),  # b2 (1, Ap)
        ],
        out_specs=pl.BlockSpec(memory_space=vmem),
    )(x, w1p, b1p, w2p, b2p)

    # Slice back to the real action dimension.
    return out[:, :A]


if __name__ == "__main__":
    # Module config: embedding_dim=8 -> in_features = 32, actions_dim=10
    embedding_dim = 8
    actions_dim = 10
    in_dim = embedding_dim * 4      # 32
    hidden = 200
    batch = 8

    key = jax.random.PRNGKey(0)
    k_x, k_w1, k_b1, k_w2, k_b2 = jax.random.split(key, 5)

    # Deterministic synthetic parameters (nn.Linear shapes: W1 (200, 32),
    # W2 (A, 200)) stored transposed as (in, out) for x @ W.
    x = jax.random.normal(k_x, (batch, in_dim), dtype=jnp.float32)
    w1 = jax.random.normal(k_w1, (in_dim, hidden), dtype=jnp.float32) * 0.1
    b1 = jax.random.normal(k_b1, (1, hidden), dtype=jnp.float32) * 0.1
    w2 = jax.random.normal(k_w2, (hidden, actions_dim), dtype=jnp.float32) * 0.1
    b2 = jax.random.normal(k_b2, (1, actions_dim), dtype=jnp.float32) * 0.1

    out = concat_forward(x, w1, b1, w2, b2)
    out = jax.block_until_ready(out)

    # Reference in plain JAX (matches the PyTorch forward pass).
    ref = jax.nn.softmax((jnp.maximum(x, 0.0) @ w1 + b1) @ w2 + b2, axis=-1)

    assert out.shape == (batch, actions_dim)
    assert jnp.allclose(out, ref, atol=1e-5, rtol=1e-5)
    assert jnp.allclose(jnp.sum(out, axis=-1), 1.0, atol=1e-5)

    print("KERNEL_OK")
</pallas_src>

<mosaic_0001>
module attributes {stable_mosaic.version = 11 : i64} {
  func.func @concat_mlp_kernel(%arg0: memref<8x32xf32, #tpu.memory_space<vmem>>, %arg1: memref<32x256xf32, #tpu.memory_space<vmem>>, %arg2: memref<1x256xf32, #tpu.memory_space<vmem>>, %arg3: memref<256x128xf32, #tpu.memory_space<vmem>>, %arg4: memref<1x128xf32, #tpu.memory_space<vmem>>, %arg5: memref<8x128xf32, #tpu.memory_space<vmem>>) attributes {dimension_semantics = [], scalar_prefetch = 0 : i64, scratch_operands = 0 : i64, tpu.core_type = #tpu.core_type<tc>} {
    %c0 = arith.constant 0 : index
    %c0_0 = arith.constant 0 : index
    %0 = vector.load %arg0[%c0, %c0_0] : memref<8x32xf32, #tpu.memory_space<vmem>>, vector<8x32xf32>
    %cst = arith.constant 0.000000e+00 : f32
    %1 = vector.broadcast %cst : f32 to vector<8x32xf32>
    %2 = arith.maximumf %0, %1 : vector<8x32xf32>
    %c0_1 = arith.constant 0 : index
    %c0_2 = arith.constant 0 : index
    %3 = vector.load %arg2[%c0_1, %c0_2] : memref<1x256xf32, #tpu.memory_space<vmem>>, vector<1x256xf32>
    %c0_3 = arith.constant 0 : index
    %c0_4 = arith.constant 0 : index
    %4 = vector.load %arg4[%c0_3, %c0_4] : memref<1x128xf32, #tpu.memory_space<vmem>>, vector<1x128xf32>
    %c0_5 = arith.constant 0 : index
    %c0_6 = arith.constant 0 : index
    %5 = vector.load %arg1[%c0_5, %c0_6] : memref<32x256xf32, #tpu.memory_space<vmem>>, vector<32x256xf32>
    %cst_7 = arith.constant dense<0.000000e+00> : vector<8x256xf32>
    %6 = tpu.matmul %2, %5, %cst_7 {dimension_numbers = #tpu.dot_dimension_numbers<[1], [0], [0], [1], [0, 0, 1, 1], [], []>} : vector<8x32xf32>, vector<32x256xf32>, vector<8x256xf32> -> vector<8x256xf32>
    %7 = vector.broadcast %3 : vector<1x256xf32> to vector<8x256xf32>
    %8 = arith.addf %6, %7 : vector<8x256xf32>
    %c0_8 = arith.constant 0 : index
    %c0_9 = arith.constant 0 : index
    %9 = vector.load %arg3[%c0_8, %c0_9] : memref<256x128xf32, #tpu.memory_space<vmem>>, vector<256x128xf32>
    %cst_10 = arith.constant dense<0.000000e+00> : vector<8x128xf32>
    %10 = tpu.matmul %8, %9, %cst_10 {dimension_numbers = #tpu.dot_dimension_numbers<[1], [0], [0], [1], [0, 0, 1, 1], [], []>} : vector<8x256xf32>, vector<256x128xf32>, vector<8x128xf32> -> vector<8x128xf32>
    %11 = vector.broadcast %4 : vector<1x128xf32> to vector<8x128xf32>
    %12 = arith.addf %10, %11 : vector<8x128xf32>
    %cst_11 = arith.constant dense<0xFF800000> : vector<8xf32>
    %13 = vector.multi_reduction <maximumf>, %12, %cst_11 [1] : vector<8x128xf32> to vector<8xf32>
    %14 = vector.shape_cast %13 : vector<8xf32> to vector<8x1xf32>
    %15 = vector.broadcast %14 : vector<8x1xf32> to vector<8x128xf32>
    %16 = arith.subf %12, %15 : vector<8x128xf32>
    %17 = math.exp %16 : vector<8x128xf32>
    %cst_12 = arith.constant dense<0.000000e+00> : vector<8xf32>
    %18 = vector.multi_reduction <add>, %17, %cst_12 [1] : vector<8x128xf32> to vector<8xf32>
    %19 = vector.shape_cast %18 : vector<8xf32> to vector<8x1xf32>
    %20 = tpu.reciprocal %19 {approx = true} : vector<8x1xf32> -> vector<8x1xf32>
    %21 = arith.mulf %19, %20 : vector<8x1xf32>
    %cst_13 = arith.constant 2.000000e+00 : f32
    %22 = vector.broadcast %cst_13 : f32 to vector<8x1xf32>
    %23 = arith.subf %22, %21 : vector<8x1xf32>
    %24 = arith.mulf %20, %23 : vector<8x1xf32>
    %25 = vector.broadcast %24 : vector<8x1xf32> to vector<8x128xf32>
    %26 = arith.mulf %17, %25 : vector<8x128xf32>
    %c0_14 = arith.constant 0 : index
    %c0_15 = arith.constant 0 : index
    %27 = vector.load %arg5[%c0_14, %c0_15] : memref<8x128xf32, #tpu.memory_space<vmem>>, vector<8x128xf32>
    tpu.vector_store %arg5[%c0_14, %c0_15], %26 {strides = array<i32>} : memref<8x128xf32, #tpu.memory_space<vmem>>, vector<8x128xf32>,
    return
  }
}

</mosaic_0001>

<bundles_post_ra>
// kernel: concat_forward.1
= control target key start
LH: loop header
LB: loop body
LE: loop exit
PB: predicated region body
PF: predicated region fallthrough
CT: control target
= control target key end

     0   :  { %v319_v4 = vmov 0.0   ;;  %vm44_vm0 = vcmask 261120   ;;  %s483_s0 = inlined_call_operand.vmem [shape: f32[8,32], index: 0, kind: input, shape index: {}]   ;;  %s484_s1 = inlined_call_operand.vmem [shape: f32[32,256], index: 1, kind: input, shape index: {}]   ;;  %s485_s2 = inlined_call_operand.vmem [shape: f32[1,256], index: 2, kind: input, shape index: {}]   ;;  %s486_s3 = inlined_call_operand.vmem [shape: f32[256,128], index: 3, kind: input, shape index: {}]   ;;  %s487_s4 = inlined_call_operand.vmem [shape: f32[1,128], index: 4, kind: input, shape index: {}]   ;;  %s488_s5 = inlined_call_operand.hbm [shape: f32[8,128], index: 5, kind: output, shape index: {}]  }
   0x1   :  { %v32_v0 = vld [vmem:[%s484_s1 + $0x38] sm:$0xff]  ;;  %v31_v1 = vld [vmem:[%s484_s1 + $0x30] sm:$0xff]  ;;  %v30_v2 = vld [vmem:[%s484_s1 + $0x28] sm:$0xff]  ;;  %112 = vmatprep.mubr.f32.mxu0 %v319_v4 }
   0x2   :  { %72 = vmatprep.subr.mxu0 %v32_v0  ;;  %v29_v3 = vld [vmem:[%s484_s1 + $0x20] sm:$0xff]  ;;  %v28_v5 = vld [vmem:[%s484_s1 + $0x18] sm:$0xff]  ;;  %v27_v6 = vld [vmem:[%s484_s1 + $0x10] sm:$0xff] }
   0x3   :  { %73 = vmatpush1.msra.mxu0 %v31_v1  ;;  %v21_v7 = vld [vmem:[%s483_s0] sm:$0xff]  ;;  %v150_v8 = vld [vmem:[%s486_s3 + $0xf8] sm:$0xff]  ;;  %v149_v10 = vld [vmem:[%s486_s3 + $0xf0] sm:$0xff] }
   0x4   :  { %74 = vmatprep.subr.mxu0 %v30_v2  ;;  %v134_v9 = vld [vmem:[%s486_s3 + $0x78] sm:$0xff]  ;;  %v26_v11 = vld [vmem:[%s484_s1 + $0x8] sm:$0xff]  ;;  %256 = vmatprep.subr.mxu1 %v150_v8  ;;  %v133_v12 = vld [vmem:[%s486_s3 + $0x70] sm:$0xff]  ;;  %v22_v14 = vmax.f32 %v21_v7, 0.0 }
   0x5   :  { %75 = vmatpush1.msra.mxu0 %v29_v3  ;;  %v25_v13 = vld [vmem:[%s484_s1] sm:$0xff]  ;;  %257 = vmatpush3.msra.mxu1 %v134_v9  ;;  %v148_v15 = vld [vmem:[%s486_s3 + $0xe8] sm:$0xff]  ;;  %v146_v19 = vld [vmem:[%s486_s3 + $0xd8] sm:$0xff] }
   0x6   :  { %76 = vmatprep.subr.mxu0 %v28_v5  ;;  %258 = vmatprep.subr.mxu1 %v149_v10  ;;  %v132_v16 = vld [vmem:[%s486_s3 + $0x68] sm:$0xff]  ;;  %v147_v17 = vld [vmem:[%s486_s3 + $0xe0] sm:$0xff]  ;;  %v130_v20 = vld [vmem:[%s486_s3 + $0x58] sm:$0xff] }
   0x7   :  { %77 = vmatpush1.msra.mxu0 %v27_v6  ;;  %259 = vmatpush3.msra.mxu1 %v133_v12  ;;  %v131_v18 = vld [vmem:[%s486_s3 + $0x60] sm:$0xff]  ;;  %v145_v21 = vld [vmem:[%s486_s3 + $0xd0] sm:$0xff] }
   0x8   :  { %78 = vmatprep.subr.mxu0 %v26_v11  ;;  %260 = vmatprep.subr.mxu1 %v148_v15  ;;  %v129_v22 = vld [vmem:[%s486_s3 + $0x50] sm:$0xff] }
   0x9   :  { %79 = vmatpush1.msra.mxu0 %v25_v13  ;;  %261 = vmatpush3.msra.mxu1 %v132_v16 }
   0xa   :  { %254 = vmatmul.mubr.msk.f32.vlgmr.msra.gmra.mxu0 %vm44_vm0, %v22_v14  ;;  %262 = vmatprep.subr.mxu1 %v147_v17 }
   0xb   :  { %263 = vmatpush3.msra.mxu1 %v131_v18 }
   0xc   :  { %264 = vmatprep.subr.mxu1 %v146_v19 }
   0xd   :  { %10 = vsyncpa [#allocation3], 0  ;;  %265 = vmatpush3.msra.mxu1 %v130_v20  ;;  %v144_v23 = vld [vmem:[%s486_s3 + $0xc8] sm:$0xff]  ;;  %v143_v25 = vld [vmem:[%s486_s3 + $0xc0] sm:$0xff]  ;;  %v34_v43 = vlaneseq }
   0xe   :  { %266 = vmatprep.subr.mxu1 %v145_v21  ;;  %v128_v24 = vld [vmem:[%s486_s3 + $0x48] sm:$0xff]  ;;  %v127_v26 = vld [vmem:[%s486_s3 + $0x40] sm:$0xff]  ;;  %v142_v27 = vld [vmem:[%s486_s3 + $0xb8] sm:$0xff] }
   0xf   :  { %267 = vmatpush3.msra.mxu1 %v129_v22  ;;  %v126_v28 = vld [vmem:[%s486_s3 + $0x38] sm:$0xff]  ;;  %v141_v29 = vld [vmem:[%s486_s3 + $0xb0] sm:$0xff]  ;;  %v140_v31 = vld [vmem:[%s486_s3 + $0xa8] sm:$0xff]  ;;  %v35_v44 = vshrl.u32 %v34_v43, 7 }
  0x10   :  { %268 = vmatprep.subr.mxu1 %v144_v23  ;;  %v125_v30 = vld [vmem:[%s486_s3 + $0x30] sm:$0xff]  ;;  %v124_v32 = vld [vmem:[%s486_s3 + $0x28] sm:$0xff]  ;;  %v139_v33 = vld [vmem:[%s486_s3 + $0xa0] sm:$0xff] }
  0x11   :  { %269 = vmatpush3.msra.mxu1 %v128_v24  ;;  %v123_v34 = vld [vmem:[%s486_s3 + $0x20] sm:$0xff]  ;;  %v138_v35 = vld [vmem:[%s486_s3 + $0x98] sm:$0xff]  ;;  %v137_v37 = vld [vmem:[%s486_s3 + $0x90] sm:$0xff]  ;;  %v40_v45 = vsub.s32 1, %v35_v44  ;;  %v36_v46 = vsub.s32 0, %v35_v44 }
  0x12   :  { %270 = vmatprep.subr.mxu1 %v143_v25  ;;  %v122_v36 = vld [vmem:[%s486_s3 + $0x18] sm:$0xff]  ;;  %v121_v38 = vld [vmem:[%s486_s3 + $0x10] sm:$0xff]  ;;  %v136_v39 = vld [vmem:[%s486_s3 + $0x88] sm:$0xff] }
  0x13   :  { %271 = vmatpush3.msra.mxu1 %v127_v26  ;;  %v120_v40 = vld [vmem:[%s486_s3 + $0x8] sm:$0xff]  ;;  %v135_v41 = vld [vmem:[%s486_s3 + $0x80] sm:$0xff] }
  0x14   :  { %272 = vmatprep.subr.mxu1 %v142_v27  ;;  %v119_v42 = vld [vmem:[%s486_s3] sm:$0xff] }
  0x15   :  { %273 = vmatpush3.msra.mxu1 %v126_v28  ;;  %v23_v47 = vld [vmem:[%s485_s2] sm:$0x3]  ;;  %s320_s2 = smov [#allocation2]  }
  0x16   :  { %274 = vmatprep.subr.mxu1 %v141_v29  ;;  %v41_v48 = vrot.slane %v23_v47, %v40_v45  ;;  %v37_v49 = vrot.slane %v23_v47, %v36_v46  ;;  %v255_v56 = vld [vmem:[%s487_s4] ss:$0 sm:$0xff]  ;;  %s246_s23 = sshll.u32 %s320_s2, 4  ;;  %s247_s23 = int_to_ptr.vmem [resolvable:$true] %s246_s23 }
  0x17   :  { %275 = vmatpush3.msra.mxu1 %v125_v30  ;;  %s297_s4 = scalar_lea.vmem %s247_s23, 128  ;;  %p302_p1 = scmp.lt.s32.totalorder %s247_s23, %s247_s23 }
  0x18   :  { %276 = vmatprep.subr.mxu1 %v140_v31  ;;  %p298_p0 = scmp.ne.s32.totalorder %s247_s23, %s297_s4  ;;  %p303_p2 = scmp.lt.s32.totalorder %s297_s4, %s297_s4 }
  0x19   :  { %277 = vmatpush3.msra.mxu1 %v124_v32 }
  0x1a   :  { %278 = vmatprep.subr.mxu1 %v139_v33  ;;  %p304_p3 = por %p303_p2, %p302_p1 }
  0x1b   :  { %279 = vmatpush3.msra.mxu1 %v123_v34 }
  0x1c   :  { %280 = vmatprep.subr.mxu1 %v138_v35  ;;  %p305_p4 = pnand %p304_p3, %p298_p0 }
  0x1d   :  { %281 = vmatpush3.msra.mxu1 %v122_v36 }
  0x1e   :  { %282 = vmatprep.subr.mxu1 %v137_v37 }
  0x1f   :  { %283 = vmatpush3.msra.mxu1 %v121_v38 }
  0x20   :  { %284 = vmatprep.subr.mxu1 %v136_v39 }
  0x21   :  { %285 = vmatpush3.msra.mxu1 %v120_v40 }
  0x22   :  { %286 = vmatprep.subr.mxu1 %v135_v41 }
  0x23   :  { %287 = vmatpush3.msra.mxu1 %v119_v42 }
  0xca   :  { %v114_v50 = vpop.f32.mrf.mxu0 }
  0xcb   :  { %v115_v53 = vadd.f32 %v114_v50, %v37_v49 }
  0xcc   :  { %v116_v51 = vpop.f32.mrf.mxu0 }
  0xcd   :  { %v117_v52 = vadd.f32 %v116_v51, %v41_v48 }
  0xcf   :  { %221 = vmatprep.mubr.f32.mxu1 %v117_v52 }
  0xd0   :  { %222 = vmatmul.mubr.f32.vlgmr.msra.gmra.mxu1 %v115_v53 }
 0x190   :  { %v288_v54 = vpop.f32.mrf.mxu1 }
 0x192   :  { %v289_v55 = vpop.f32.mrf.mxu1 }
 0x193   :  { %v290_v57 = vadd.f32 %v289_v55, %v288_v54 }
 0x195   :  { %v224_v58 = vadd.f32 %v290_v57, %v255_v56 }
 0x197   :  { %227 = vmax.xlane.f32.xlu0 %v224_v58 }
 0x220   :  { %v228_v59 = vpop.xlane.xlu0 %227 }
 0x221   :  { %v229_v60 = vsub.f32 %v224_v58, %v228_v59 }
 0x223   :  { %v230_v61 = vmul.f32 1.442695, %v229_v60 }
 0x225   :  { %293 = vpow2.f32 %v230_v61 }
 0x232   :  { %v294_v62 = vpop.eup %293 }
 0x233   :  { %232 = vadd.xlane.f32.xlu0 %v294_v62 }
 0x2bc   :  { %v233_v63 = vpop.xlane.xlu0 %232 }
 0x2bd   :  { %295 = vrcp.f32 %v233_v63 }
 0x2ca   :  { %v296_v0 = vpop.eup %295 }
 0x2cb   :  { %v235_v1 = vmul.f32 %v296_v0, %v233_v63 }
 0x2cd   :  { %v236_v2 = vsub.f32 2.0, %v235_v1 }
 0x2cf   :  { %v237_v3 = vmul.f32 %v296_v0, %v236_v2 }
 0x2d1   :  { %v238_v4 = vmul.f32 %v294_v62, %v237_v3 }
 0x2d3   :  { %239 = vst [vmem:[#allocation2] sm:$0xff] %v238_v4 }
 0x2d4   :  { %308 = shalt.err (!%p305_p4)
}
 0x2d5   :  { %249 = dma.vmem_to_hbm [thread:$0]  %s247_s23, 128, %s488_s5, [#allocation3]  }
 0x2d6   :  { %317 = dma.done.wait [#allocation3], 128  }
 0x2d7   :  { %318 = vsyncadd [#allocation3], 4294967168 }
 0x2d8   :  { %253 = vsyncpa [#allocation3], 1 }

</bundles_post_ra>
